<compile_context>
chip_gen: v6e
topology: v6e:2x2x1
jax: 0.10.0
libtpu: 0.0.40
codegen_flags: <defaults>
</compile_context>

<pallas_src>
import functools

import jax
import jax.numpy as jnp
from jax.experimental import pallas as pl
from jax.experimental.pallas import tpu as pltpu

_LANE = 128      # last-dim tile granule (vreg lanes)
_SUBLANE = 8     # second-to-last-dim tile granule (f32 sublanes)


def _round_up(n, m):
    return ((n + m - 1) // m) * m


def _pad2d(a, rows, cols):
    r, c = a.shape
    if r == rows and c == cols:
        return a
    return jnp.pad(a, ((0, rows - r), (0, cols - c)))


def _two_linear_kernel(x_ref, w1_ref, w2_ref, o_ref, *, act):
    # x_ref : (tm,    Cin_p )  row tile of the input
    # w1_ref: (Cin_p, Cmid_p)  full (pre-transposed, padded) first weight
    # w2_ref: (Cmid_p, Cout_p) full (pre-transposed, padded) second weight
    h = jnp.dot(x_ref[...], w1_ref[...], preferred_element_type=jnp.float32)
    if act:
        h = h * jax.nn.sigmoid(h)          # swish in f32 (VPU + EUP)
    # Deliberate choice: the second matmul's LHS is cast to the weight operand
    # dtype (no-op for f32 weights; bf16 feeds the MXU at full rate on
    # v6e/v7x).  Accumulation stays f32 via preferred_element_type.
    y = jnp.dot(h.astype(w2_ref.dtype), w2_ref[...],
                preferred_element_type=jnp.float32)
    if act:
        y = y * jax.nn.sigmoid(y)          # swish
    o_ref[...] = y.astype(o_ref.dtype)


def _fused_call(x_p, w1_t, w2_t, *, act, tm, out_dtype):
    """x_p: (N_p, Cin_p) padded rows/features; weights pre-padded/transposed."""
    N_p, Cin_p = x_p.shape
    _, Cmid_p = w1_t.shape
    _, Cout_p = w2_t.shape

    # VMEM budget: double-buffered x/out row tiles + single-buffered weights.
    x_bytes = x_p.dtype.itemsize
    w_bytes = w1_t.dtype.itemsize
    o_bytes = jnp.dtype(out_dtype).itemsize
    vmem_need = (2 * tm * Cin_p * x_bytes
                 + 2 * tm * Cout_p * o_bytes
                 + Cin_p * Cmid_p * w_bytes
                 + Cmid_p * Cout_p * w_bytes)
    vmem_limit = int(min(max(vmem_need + (8 << 20), 32 << 20), 128 << 20))

    kernel = functools.partial(_two_linear_kernel, act=act)
    return pl.pallas_call(
        kernel,
        out_shape=jax.ShapeDtypeStruct((N_p, Cout_p), out_dtype),
        grid=(N_p // tm,),
        in_specs=[
            pl.BlockSpec((tm, Cin_p), lambda i: (i, 0)),
            # Weights are grid-invariant -> single buffer (halves VMEM use).
            pl.BlockSpec((Cin_p, Cmid_p), lambda i: (0, 0),
                         pipeline_mode=pl.Buffered(1)),
            pl.BlockSpec((Cmid_p, Cout_p), lambda i: (0, 0),
                         pipeline_mode=pl.Buffered(1)),
        ],
        out_specs=pl.BlockSpec((tm, Cout_p), lambda i: (i, 0)),
        compiler_params=pltpu.CompilerParams(
            dimension_semantics=("parallel",),   # row tiles shard across TCs (v7x)
            vmem_limit_bytes=vmem_limit,
        ),
    )(x_p, w1_t, w2_t)


class TwoLinear:
    """Weight-stationary fused TwoLinear (ProNet) forward.

    Takes PyTorch-layout weights (w1: [middle, in], w2: [out, middle]) and
    does the transpose / lane-dense padding / optional bf16 cast exactly once.
    """

    def __init__(self, w1, w2, *, act=False, tm=256, operand_dtype=None):
        Cmid, Cin = w1.shape
        Cout, Cmid2 = w2.shape
        assert Cmid == Cmid2, "lin1/lin2 weight shapes do not compose"
        self.in_channels = Cin
        self.middle_channels = Cmid
        self.out_channels = Cout
        self.act = act
        self.tm = max(_SUBLANE, (tm // _SUBLANE) * _SUBLANE)
        self.operand_dtype = operand_dtype

        Cin_p = _round_up(Cin, _LANE)
        Cmid_p = _round_up(Cmid, _LANE)
        Cout_p = _round_up(Cout, _LANE)

        w1_t = jnp.transpose(w1)   # [Cin, Cmid]
        w2_t = jnp.transpose(w2)   # [Cmid, Cout]
        if operand_dtype is not None:
            w1_t = w1_t.astype(operand_dtype)
            w2_t = w2_t.astype(operand_dtype)
        # Zero padding is exact: padded columns/rows contribute 0 to the dots
        # and swish(0) == 0, so sliced results match the unpadded math.
        self.w1_t = _pad2d(w1_t, Cin_p, Cmid_p)
        self.w2_t = _pad2d(w2_t, Cmid_p, Cout_p)

    def __call__(self, x):
        N, Cin = x.shape
        assert Cin == self.in_channels
        out_dtype = x.dtype                      # final result stays in x's dtype
        if self.operand_dtype is not None:
            x = x.astype(self.operand_dtype)     # narrow MXU operands (v6e/v7x)

        Cin_p, _ = self.w1_t.shape
        # Row tile: as large as requested but never larger than the (padded)
        # problem, and a multiple of the 8-row sublane granule.  For large N
        # this keeps many parallel grid steps (feeds both v7x TensorCores).
        tm = min(self.tm, _round_up(N, _SUBLANE))
        tm = max(_SUBLANE, (tm // _SUBLANE) * _SUBLANE)
        N_p = _round_up(N, tm)

        x_p = _pad2d(x, N_p, Cin_p)
        y_p = _fused_call(x_p, self.w1_t, self.w2_t,
                          act=self.act, tm=tm, out_dtype=out_dtype)
        return y_p[:N, :self.out_channels]


def _glorot(key, out_c, in_c):
    # torch_geometric inits.glorot: U(-a, a), a = sqrt(6 / (fan_in + fan_out))
    a = (6.0 / (in_c + out_c)) ** 0.5
    return jax.random.uniform(key, (out_c, in_c), jnp.float32, -a, a)


if __name__ == "__main__":
    key = jax.random.PRNGKey(0)
    k_x, k_w1, k_w2 = jax.random.split(key, 3)

    N, Cin, Cmid, Cout = 16, 32, 64, 32
    act = True  # exercise the swish path

    x = jax.random.normal(k_x, (N, Cin), jnp.float32)
    w1 = _glorot(k_w1, Cmid, Cin)   # lin1.weight  [middle, in]
    w2 = _glorot(k_w2, Cout, Cmid)  # lin2.weight  [out, middle]

    # Reference (plain JAX) TwoLinear forward.
    h_ref = x @ w1.T
    h_ref = h_ref * jax.nn.sigmoid(h_ref)
    y_ref = h_ref @ w2.T
    y_ref = y_ref * jax.nn.sigmoid(y_ref)

    # f32 operands (exact match to the reference).
    mod = TwoLinear(w1, w2, act=act)
    y = jax.block_until_ready(mod(x))
    assert y.shape == (N, Cout)
    assert jnp.allclose(y, y_ref, atol=1e-5, rtol=1e-5)

    # bf16 MXU operands with f32 accumulation (v6e/v7x recommendation).
    mod_bf16 = TwoLinear(w1, w2, act=act, operand_dtype=jnp.bfloat16)
    y_bf16 = jax.block_until_ready(mod_bf16(x))
    assert y_bf16.shape == (N, Cout)
    assert y_bf16.dtype == x.dtype
    assert jnp.allclose(y_bf16, y_ref, atol=5e-2, rtol=5e-2)

    print("KERNEL_OK")
</pallas_src>

<mosaic_0001>
module attributes {stable_mosaic.version = 11 : i64} {
  func.func @_two_linear_kernel(%arg0: i32, %arg1: memref<16x128xf32, #tpu.memory_space<vmem>>, %arg2: memref<128x128xf32, #tpu.memory_space<vmem>>, %arg3: memref<128x128xf32, #tpu.memory_space<vmem>>, %arg4: memref<16x128xf32, #tpu.memory_space<vmem>>) attributes {dimension_semantics = [#tpu.dimension_semantics<parallel>], iteration_bounds = array<i64: 1>, scalar_prefetch = 0 : i64, scratch_operands = 0 : i64, tpu.core_type = #tpu.core_type<tc>, window_params = [{transform_indices = @transform_0, window_bounds = array<i64: 16, 128>}, {pipeline_mode = #tpu.pipeline_mode<synchronous>, transform_indices = @transform_1, window_bounds = array<i64: 128, 128>}, {pipeline_mode = #tpu.pipeline_mode<synchronous>, transform_indices = @transform_2, window_bounds = array<i64: 128, 128>}, {transform_indices = @transform_3, window_bounds = array<i64: 16, 128>}]} {
    %c0 = arith.constant 0 : index
    %c0_0 = arith.constant 0 : index
    %0 = vector.load %arg1[%c0, %c0_0] : memref<16x128xf32, #tpu.memory_space<vmem>>, vector<16x128xf32>
    %c0_1 = arith.constant 0 : index
    %c0_2 = arith.constant 0 : index
    %1 = vector.load %arg2[%c0_1, %c0_2] : memref<128x128xf32, #tpu.memory_space<vmem>>, vector<128x128xf32>
    %cst = arith.constant dense<0.000000e+00> : vector<16x128xf32>
    %2 = tpu.matmul %0, %1, %cst {dimension_numbers = #tpu.dot_dimension_numbers<[1], [0], [0], [1], [0, 0, 1, 1], [], []>} : vector<16x128xf32>, vector<128x128xf32>, vector<16x128xf32> -> vector<16x128xf32>
    %3 = arith.negf %2 : vector<16x128xf32>
    %4 = math.exp %3 : vector<16x128xf32>
    %cst_3 = arith.constant 1.000000e+00 : f32
    %5 = vector.broadcast %cst_3 : f32 to vector<16x128xf32>
    %6 = arith.addf %5, %4 : vector<16x128xf32>
    %7 = arith.divf %5, %6 : vector<16x128xf32>
    %8 = arith.mulf %2, %7 : vector<16x128xf32>
    %c0_4 = arith.constant 0 : index
    %c0_5 = arith.constant 0 : index
    %9 = vector.load %arg3[%c0_4, %c0_5] : memref<128x128xf32, #tpu.memory_space<vmem>>, vector<128x128xf32>
    %cst_6 = arith.constant dense<0.000000e+00> : vector<16x128xf32>
    %10 = tpu.matmul %8, %9, %cst_6 {dimension_numbers = #tpu.dot_dimension_numbers<[1], [0], [0], [1], [0, 0, 1, 1], [], []>} : vector<16x128xf32>, vector<128x128xf32>, vector<16x128xf32> -> vector<16x128xf32>
    %11 = arith.negf %10 : vector<16x128xf32>
    %12 = math.exp %11 : vector<16x128xf32>
    %cst_7 = arith.constant 1.000000e+00 : f32
    %13 = vector.broadcast %cst_7 : f32 to vector<16x128xf32>
    %14 = arith.addf %13, %12 : vector<16x128xf32>
    %15 = arith.divf %13, %14 : vector<16x128xf32>
    %16 = arith.mulf %10, %15 : vector<16x128xf32>
    %c0_8 = arith.constant 0 : index
    %c0_9 = arith.constant 0 : index
    %17 = vector.load %arg4[%c0_8, %c0_9] : memref<16x128xf32, #tpu.memory_space<vmem>>, vector<16x128xf32>
    tpu.vector_store %arg4[%c0_8, %c0_9], %16 {strides = array<i32>} : memref<16x128xf32, #tpu.memory_space<vmem>>, vector<16x128xf32>,
    return
  }
  func.func @transform_0(%arg0: i32) -> (i32, i32) {
    %c0_i32 = arith.constant 0 : i32
    %c0_i32_0 = arith.constant 0 : i32
    return %arg0, %c0_i32 : i32, i32
  }
  func.func @transform_1(%arg0: i32) -> (i32, i32) {
    %c0_i32 = arith.constant 0 : i32
    %c0_i32_0 = arith.constant 0 : i32
    %c0_i32_1 = arith.constant 0 : i32
    return %c0_i32, %c0_i32_0 : i32, i32
  }
  func.func @transform_2(%arg0: i32) -> (i32, i32) {
    %c0_i32 = arith.constant 0 : i32
    %c0_i32_0 = arith.constant 0 : i32
    %c0_i32_1 = arith.constant 0 : i32
    return %c0_i32, %c0_i32_0 : i32, i32
  }
  func.func @transform_3(%arg0: i32) -> (i32, i32) {
    %c0_i32 = arith.constant 0 : i32
    %c0_i32_0 = arith.constant 0 : i32
    return %arg0, %c0_i32 : i32, i32
  }
}

</mosaic_0001>

<bundles_post_ra>
// kernel: tpu_custom_call.1
= control target key start
LH: loop header
LB: loop body
LE: loop exit
PB: predicated region body
PF: predicated region fallthrough
CT: control target
= control target key end

     0   :  { %8 = vsyncpa [#allocation3], 0  ;;  %s556_s0 = inlined_call_operand.hbm [shape: f32[16,128], index: 0, kind: input, shape index: {}]   ;;  %s557_s1 = inlined_call_operand.hbm [shape: f32[128,128], index: 1, kind: input, shape index: {}]   ;;  %s558_s2 = inlined_call_operand.hbm [shape: f32[128,128], index: 2, kind: input, shape index: {}]   ;;  %s559_s3 = inlined_call_operand.hbm [shape: f32[16,128], index: 3, kind: output, shape index: {}]  }
   0x1   :  { %9 = vsyncpa [#allocation6], 0 }
   0x2   :  { %10 = vsyncpa [#allocation4], 0  ;;  %s506_s12 = smov [#allocation5]   ;;  %s507_s14 = smov [#allocation2]  }
   0x3   :  { %s28_s13 = sshll.u32 %s506_s12, 4  ;;  %s16_s15 = sshll.u32 %s507_s14, 4  ;;  %s29_s13 = int_to_ptr.vmem [resolvable:$true] %s28_s13  ;;  %s17_s15 = int_to_ptr.vmem [resolvable:$true] %s16_s15 }
   0x4   :  { %s428_s16 = scalar_lea.vmem %s29_s13, 2048  ;;  %p433_p1 = scmp.lt.s32.totalorder %s29_s13, %s29_s13 }
   0x5   :  { %p429_p0 = scmp.ne.s32.totalorder %s29_s13, %s428_s16  ;;  %p434_p2 = scmp.lt.s32.totalorder %s428_s16, %s428_s16 }
   0x7   :  { %p435_p3 = por %p434_p2, %p433_p1 }
   0x9   :  { %p436_p4 = pnand %p435_p3, %p429_p0 }
   0xb   :  { %439 = shalt.err (!%p436_p4)
}
   0xc   :  { %s508_s17 = smov 128   ;;  %s509_s18 = smov 8  }
   0xd   :  { %34 = dma.hbm_to_vmem [thread:$0]  %s557_s1, 2048, %s29_s13, [#allocation6], %s508_s17, %s508_s17, %s509_s18  }
   0xe   :  { %s448_s21 = scalar_lea.vmem %s17_s15, 256  ;;  %p453_p6 = scmp.lt.s32.totalorder %s17_s15, %s17_s15 }
   0xf   :  { %p449_p5 = scmp.ne.s32.totalorder %s17_s15, %s448_s21  ;;  %p454_p7 = scmp.lt.s32.totalorder %s448_s21, %s448_s21 }
  0x11   :  { %p455_p8 = por %p454_p7, %p453_p6 }
  0x13   :  { %p456_p9 = pnand %p455_p8, %p449_p5 }
  0x15   :  { %459 = shalt.err (!%p456_p9)
}
  0x16   :  { %22 = dma.hbm_to_vmem [thread:$0]  %s556_s0, 256, %s17_s15, [#allocation3], %s508_s17, %s508_s17, %s509_s18  }
  0x17   :  { %s510_s24 = smov [#allocation7]  }
  0x18   :  { %s40_s25 = sshll.u32 %s510_s24, 4  ;;  %s41_s25 = int_to_ptr.vmem [resolvable:$true] %s40_s25 }
  0x19   :  { %s468_s26 = scalar_lea.vmem %s41_s25, 2048  ;;  %p473_p11 = scmp.lt.s32.totalorder %s41_s25, %s41_s25 }
  0x1a   :  { %p469_p10 = scmp.ne.s32.totalorder %s41_s25, %s468_s26  ;;  %p474_p12 = scmp.lt.s32.totalorder %s468_s26, %s468_s26 }
  0x1c   :  { %p475_p13 = por %p474_p12, %p473_p11 }
  0x1e   :  { %p476_p0 = pnand %p475_p13, %p469_p10 }
  0x20   :  { %479 = shalt.err (!%p476_p0)
}
  0x21   :  { %46 = dma.hbm_to_vmem [thread:$0]  %s558_s2, 2048, %s41_s25, [#allocation6], %s508_s17, %s508_s17, %s509_s18  }
  0x22   :  { %500 = dma.done.wait [#allocation3], 256  }
  0x23   :  { %501 = vsyncadd [#allocation3], 4294967040 }
  0x24   :  { %502 = dma.done.wait [#allocation6], 4096  }
  0x25   :  { %503 = vsyncadd [#allocation6], 4294963200  ;;  %v73_v0 = vld [vmem:[#allocation5 + $0x78] sm:$0xff]  ;;  %v72_v1 = vld [vmem:[#allocation5 + $0x70] sm:$0xff]  ;;  %s511_s0 = smov [#allocation8]  }
  0x26   :  { %328 = vmatprep.subr.mxu0 %v73_v0  ;;  %v71_v2 = vld [vmem:[#allocation5 + $0x68] sm:$0xff]  ;;  %v70_v3 = vld [vmem:[#allocation5 + $0x60] sm:$0xff]  ;;  %v56_v4 = vld [vmem:[#allocation2] sm:$0xff]  ;;  %s275_s2 = sshll.u32 %s511_s0, 4  ;;  %s276_s2 = int_to_ptr.vmem [resolvable:$true] %s275_s2 }
  0x27   :  { %329 = vmatpush3.msra.mxu0 %v73_v0  ;;  %v69_v5 = vld [vmem:[#allocation5 + $0x58] sm:$0xff]  ;;  %360 = vmatprep.mubr.f32.mxu0 %v56_v4  ;;  %v68_v6 = vld [vmem:[#allocation5 + $0x50] sm:$0xff]  ;;  %v67_v7 = vld [vmem:[#allocation5 + $0x48] sm:$0xff]  ;;  %s480_s28 = scalar_lea.vmem %s276_s2, 256  ;;  %p485_p2 = scmp.lt.s32.totalorder %s276_s2, %s276_s2 }
  0x28   :  { %330 = vmatprep.subr.mxu0 %v72_v1  ;;  %v66_v8 = vld [vmem:[#allocation5 + $0x40] sm:$0xff]  ;;  %v65_v9 = vld [vmem:[#allocation5 + $0x38] sm:$0xff]  ;;  %v64_v10 = vld [vmem:[#allocation5 + $0x30] sm:$0xff]  ;;  %p481_p1 = scmp.ne.s32.totalorder %s276_s2, %s480_s28  ;;  %p486_p3 = scmp.lt.s32.totalorder %s480_s28, %s480_s28 }
  0x29   :  { %331 = vmatpush3.msra.mxu0 %v72_v1  ;;  %v63_v11 = vld [vmem:[#allocation5 + $0x28] sm:$0xff]  ;;  %v62_v12 = vld [vmem:[#allocation5 + $0x20] sm:$0xff]  ;;  %v61_v13 = vld [vmem:[#allocation5 + $0x18] sm:$0xff] }
  0x2a   :  { %332 = vmatprep.subr.mxu0 %v71_v2  ;;  %v60_v14 = vld [vmem:[#allocation5 + $0x10] sm:$0xff]  ;;  %v59_v15 = vld [vmem:[#allocation5 + $0x8] sm:$0xff]  ;;  %v58_v16 = vld [vmem:[#allocation5] sm:$0xff]  ;;  %p487_p4 = por %p486_p3, %p485_p2 }
  0x2b   :  { %333 = vmatpush3.msra.mxu0 %v71_v2  ;;  %v57_v17 = vld [vmem:[#allocation2 + $0x8] sm:$0xff]  ;;  %v177_v19 = vld [vmem:[#allocation7 + $0x70] sm:$0xff]  ;;  %v176_v20 = vld [vmem:[#allocation7 + $0x68] sm:$0xff] }
  0x2c   :  { %334 = vmatprep.subr.mxu0 %v70_v3  ;;  %v178_v18 = vld [vmem:[#allocation7 + $0x78] sm:$0xff]  ;;  %v175_v21 = vld [vmem:[#allocation7 + $0x60] sm:$0xff]  ;;  %v173_v23 = vld [vmem:[#allocation7 + $0x50] sm:$0xff]  ;;  %p488_p5 = pnand %p487_p4, %p481_p1 }
  0x2d   :  { %335 = vmatpush3.msra.mxu0 %v70_v3  ;;  %363 = vmatprep.subr.mxu1 %v178_v18  ;;  %v174_v22 = vld [vmem:[#allocation7 + $0x58] sm:$0xff]  ;;  %v172_v24 = vld [vmem:[#allocation7 + $0x48] sm:$0xff]  ;;  %v171_v25 = vld [vmem:[#allocation7 + $0x40] sm:$0xff] }
  0x2e   :  { %336 = vmatprep.subr.mxu0 %v69_v5  ;;  %364 = vmatpush3.msra.mxu1 %v178_v18  ;;  %v170_v26 = vld [vmem:[#allocation7 + $0x38] sm:$0xff]  ;;  %v169_v27 = vld [vmem:[#allocation7 + $0x30] sm:$0xff]  ;;  %v168_v28 = vld [vmem:[#allocation7 + $0x28] sm:$0xff] }
  0x2f   :  { %337 = vmatpush3.msra.mxu0 %v69_v5  ;;  %365 = vmatprep.subr.mxu1 %v177_v19  ;;  %v167_v29 = vld [vmem:[#allocation7 + $0x20] sm:$0xff]  ;;  %v166_v30 = vld [vmem:[#allocation7 + $0x18] sm:$0xff]  ;;  %v165_v31 = vld [vmem:[#allocation7 + $0x10] sm:$0xff] }
  0x30   :  { %338 = vmatprep.subr.mxu0 %v68_v6  ;;  %366 = vmatpush3.msra.mxu1 %v177_v19  ;;  %v164_v32 = vld [vmem:[#allocation7 + $0x8] sm:$0xff]  ;;  %v163_v33 = vld [vmem:[#allocation7] sm:$0xff] }
  0x31   :  { %339 = vmatpush3.msra.mxu0 %v68_v6  ;;  %367 = vmatprep.subr.mxu1 %v176_v20 }
  0x32   :  { %340 = vmatprep.subr.mxu0 %v67_v7  ;;  %368 = vmatpush3.msra.mxu1 %v176_v20 }
  0x33   :  { %341 = vmatpush3.msra.mxu0 %v67_v7  ;;  %369 = vmatprep.subr.mxu1 %v175_v21 }
  0x34   :  { %342 = vmatprep.subr.mxu0 %v66_v8  ;;  %370 = vmatpush3.msra.mxu1 %v175_v21 }
  0x35   :  { %343 = vmatpush3.msra.mxu0 %v66_v8  ;;  %371 = vmatprep.subr.mxu1 %v174_v22 }
  0x36   :  { %344 = vmatprep.subr.mxu0 %v65_v9  ;;  %372 = vmatpush3.msra.mxu1 %v174_v22 }
  0x37   :  { %345 = vmatpush3.msra.mxu0 %v65_v9  ;;  %373 = vmatprep.subr.mxu1 %v173_v23 }
  0x38   :  { %346 = vmatprep.subr.mxu0 %v64_v10  ;;  %374 = vmatpush3.msra.mxu1 %v173_v23 }
  0x39   :  { %347 = vmatpush3.msra.mxu0 %v64_v10  ;;  %375 = vmatprep.subr.mxu1 %v172_v24 }
  0x3a   :  { %348 = vmatprep.subr.mxu0 %v63_v11  ;;  %376 = vmatpush3.msra.mxu1 %v172_v24 }
  0x3b   :  { %349 = vmatpush3.msra.mxu0 %v63_v11  ;;  %377 = vmatprep.subr.mxu1 %v171_v25 }
  0x3c   :  { %350 = vmatprep.subr.mxu0 %v62_v12  ;;  %378 = vmatpush3.msra.mxu1 %v171_v25 }
  0x3d   :  { %351 = vmatpush3.msra.mxu0 %v62_v12  ;;  %379 = vmatprep.subr.mxu1 %v170_v26 }
  0x3e   :  { %352 = vmatprep.subr.mxu0 %v61_v13  ;;  %380 = vmatpush3.msra.mxu1 %v170_v26 }
  0x3f   :  { %353 = vmatpush3.msra.mxu0 %v61_v13  ;;  %381 = vmatprep.subr.mxu1 %v169_v27 }
  0x40   :  { %354 = vmatprep.subr.mxu0 %v60_v14  ;;  %382 = vmatpush3.msra.mxu1 %v169_v27 }
  0x41   :  { %355 = vmatpush3.msra.mxu0 %v60_v14  ;;  %383 = vmatprep.subr.mxu1 %v168_v28 }
  0x42   :  { %356 = vmatprep.subr.mxu0 %v59_v15  ;;  %384 = vmatpush3.msra.mxu1 %v168_v28 }
  0x43   :  { %357 = vmatpush3.msra.mxu0 %v59_v15  ;;  %385 = vmatprep.subr.mxu1 %v167_v29 }
  0x44   :  { %358 = vmatprep.subr.mxu0 %v58_v16  ;;  %386 = vmatpush3.msra.mxu1 %v167_v29 }
  0x45   :  { %359 = vmatpush3.msra.mxu0 %v58_v16  ;;  %387 = vmatprep.subr.mxu1 %v166_v30 }
  0x46   :  { %361 = vmatmul.mubr.f32.vlgmr.msra.gmra.mxu0 %v57_v17  ;;  %388 = vmatpush3.msra.mxu1 %v166_v30 }
  0x47   :  { %389 = vmatprep.subr.mxu1 %v165_v31 }
  0x48   :  { %390 = vmatpush3.msra.mxu1 %v165_v31 }
  0x49   :  { %391 = vmatprep.subr.mxu1 %v164_v32 }
  0x4a   :  { %392 = vmatpush3.msra.mxu1 %v164_v32 }
  0x4b   :  { %393 = vmatprep.subr.mxu1 %v163_v33 }
  0x4c   :  { %394 = vmatpush3.msra.mxu1 %v163_v33 }
 0x106   :  { %v362_v34 = vpop.f32.mrf.mxu0 }
 0x107   :  { %v289_v35 = vmul.f32 -1.442695, %v362_v34 }
 0x108   :  { %v140_v36 = vpop.f32.mrf.mxu0 }
 0x109   :  { %404 = vpow2.f32 %v289_v35  ;;  %v288_v37 = vmul.f32 -1.442695, %v140_v36 }
 0x10b   :  { %406 = vpow2.f32 %v288_v37 }
 0x116   :  { %v405_v38 = vpop.eup %404 }
 0x117   :  { %v156_v39 = vadd.f32 1.0, %v405_v38 }
 0x118   :  { %v407_v40 = vpop.eup %406 }
 0x119   :  { %v155_v41 = vadd.f32 1.0, %v407_v40  ;;  %408 = vrcp.f32 %v156_v39 }
 0x11b   :  { %410 = vrcp.f32 %v155_v41 }
 0x126   :  { %v409_v42 = vpop.eup %408 }
 0x127   :  { %v162_v45 = vmul.f32 %v409_v42, %v362_v34 }
 0x128   :  { %v411_v43 = vpop.eup %410 }
 0x129   :  { %v161_v44 = vmul.f32 %v411_v43, %v140_v36 }
 0x12b   :  { %395 = vmatprep.mubr.f32.mxu1 %v161_v44 }
 0x12c   :  { %396 = vmatmul.mubr.f32.vlgmr.msra.gmra.mxu1 %v162_v45 }
 0x1ec   :  { %v397_v46 = vpop.f32.mrf.mxu1 }
 0x1ed   :  { %v291_v47 = vmul.f32 -1.442695, %v397_v46 }
 0x1ee   :  { %v245_v48 = vpop.f32.mrf.mxu1 }
 0x1ef   :  { %412 = vpow2.f32 %v291_v47  ;;  %v290_v49 = vmul.f32 -1.442695, %v245_v48 }
 0x1f1   :  { %414 = vpow2.f32 %v290_v49 }
 0x1fc   :  { %v413_v50 = vpop.eup %412 }
 0x1fd   :  { %v261_v51 = vadd.f32 1.0, %v413_v50 }
 0x1fe   :  { %v415_v52 = vpop.eup %414 }
 0x1ff   :  { %416 = vrcp.f32 %v261_v51  ;;  %v260_v53 = vadd.f32 1.0, %v415_v52 }
 0x201   :  { %418 = vrcp.f32 %v260_v53 }
 0x20c   :  { %v417_v54 = vpop.eup %416 }
 0x20d   :  { %v267_v55 = vmul.f32 %v417_v54, %v397_v46 }
 0x20e   :  { %v419_v56 = vpop.eup %418 }
 0x20f   :  { %269 = vst [vmem:[#allocation8 + $0x8] sm:$0xff] %v267_v55  ;;  %v266_v57 = vmul.f32 %v419_v56, %v245_v48 }
 0x211   :  { %268 = vst [vmem:[#allocation8] sm:$0xff] %v266_v57 }
 0x212   :  { %491 = shalt.err (!%p488_p5)
}
 0x213   :  { %281 = dma.vmem_to_hbm [thread:$0]  %s276_s2, 256, %s559_s3, [#allocation4], %s508_s17, %s508_s17, %s509_s18  }
 0x214   :  { %504 = dma.done.wait [#allocation4], 256  }
 0x215   :  { %505 = vsyncadd [#allocation4], 4294967040 }
 0x216   :  { %285 = vsyncpa [#allocation3], 1 }
 0x217   :  { %286 = vsyncpa [#allocation6], 1 }
 0x218   :  { %287 = vsyncpa [#allocation4], 1 }

</bundles_post_ra>
